<compile_context>
chip_gen: v6e
topology: v6e:2x2x1
jax: 0.10.0
libtpu: 0.0.40
codegen_flags: <defaults>
</compile_context>

<pallas_src>
import math

import jax
import jax.numpy as jnp
from jax.experimental import pallas as pl
from jax.experimental.pallas import tpu as pltpu


# ---------------------------------------------------------------------------
# Kernels
# ---------------------------------------------------------------------------

def _add_pe_kernel(x_ref, pe_ref, o_ref):
    # Blocks: x/o (tile_rows, 128), pe (tile_rows, 128). Pure element-wise add
    # in f32, single cast at the store.
    o_ref[...] = (
        x_ref[...].astype(jnp.float32) + pe_ref[...].astype(jnp.float32)
    ).astype(o_ref.dtype)


def _add_pe_bcast_kernel(x_ref, pe_ref, o_ref):
    # Tiny-input path: x/o (batch, rows, 128), pe (rows, 128); one grid step.
    o_ref[...] = (
        x_ref[...].astype(jnp.float32)
        + pe_ref[...][None, :, :].astype(jnp.float32)
    ).astype(o_ref.dtype)


# ---------------------------------------------------------------------------
# PE table (built once, in the wrapper — no transcendentals in the kernel)
# ---------------------------------------------------------------------------

def _build_pe(seq_len: int, d_model: int) -> jax.Array:
    """Sinusoidal table, identical to the PyTorch buffer construction (f32)."""
    position = jnp.arange(seq_len, dtype=jnp.float32)[:, None]
    divide_by = jnp.exp(
        jnp.arange(0, d_model, 2, dtype=jnp.float32) * (-math.log(10000.0) / d_model)
    )
    pe = jnp.zeros((seq_len, d_model), jnp.float32)
    pe = pe.at[:, 0::2].set(jnp.sin(position * divide_by))
    pe = pe.at[:, 1::2].set(jnp.cos(position * divide_by))
    return pe


# ---------------------------------------------------------------------------
# Tiling / dispatch heuristics
# ---------------------------------------------------------------------------

# Total double-buffered working-set budget:  2*(x + out + pe) tiles.
# 12 MiB fits v5e's 16 MiB default scoped-VMEM limit with headroom for
# internal scratch, stays well under v7x's 64 MiB physical VMEM, and gives
# ~2 MiB/array f32 tiles (past the measured ~85% HBM-roofline knee).
_VMEM_WORKING_SET_BUDGET = 12 * 1024 * 1024

# Below this total input size, use the single-step broadcast kernel (grid
# overhead dominates a tiny element-wise add).
_TINY_TOTAL_BYTES = 512 * 1024


def _pick_row_tile(rows: int, lane: int, x_bytes: int, pe_bytes: int) -> int:
    """Largest row tile whose full double-buffered footprint fits the budget."""
    per_row = lane * (2 * x_bytes + 2 * x_bytes + 2 * pe_bytes)  # x, out, pe
    max_rows = max(1, _VMEM_WORKING_SET_BUDGET // per_row)
    if rows <= max_rows:
        return rows
    # Sublane alignment for the second-to-last block dim (packed dtypes need
    # more rows per vreg).
    sub = 8 if x_bytes >= 4 else (16 if x_bytes == 2 else 32)
    return max(sub, (max_rows // sub) * sub)


# ---------------------------------------------------------------------------
# Public wrapper
# ---------------------------------------------------------------------------

def positional_encoding(x: jax.Array) -> jax.Array:
    """x: (batch, seq_len, d_model) -> x + PE (eval-mode dropout == identity)."""
    batch, seq_len, d_model = x.shape
    assert d_model % 2 == 0, "d_model must be even (sin/cos interleave)"

    pe = _build_pe(seq_len, d_model)

    # Lane-dense view: zero-pad the seq axis (pad rows are sliced off at the
    # end) so seq*d_model is a multiple of 128, then view (seq, d) as
    # (rows, 128).  Output stores are full-width vst even for d_model < 128.
    mult = 128 // math.gcd(d_model, 128)
    seq_pad = (-seq_len) % mult
    if seq_pad:
        x_p = jnp.pad(x, ((0, 0), (0, seq_pad), (0, 0)))
        pe_p = jnp.pad(pe, ((0, seq_pad), (0, 0)))
    else:
        x_p, pe_p = x, pe
    seq_padded = seq_len + seq_pad

    lane = 128
    rows = (seq_padded * d_model) // lane
    xr = x_p.reshape(batch, rows, lane)

    x_bytes = jnp.dtype(x.dtype).itemsize
    # Halve the PE HBM stream for sub-32-bit activations; the add is still f32.
    pe_dtype = x.dtype if x_bytes < 4 else jnp.float32
    per = pe_p.reshape(rows, lane).astype(pe_dtype)
    pe_bytes = jnp.dtype(pe_dtype).itemsize

    total_input_bytes = batch * rows * lane * x_bytes + rows * lane * pe_bytes

    if total_input_bytes <= _TINY_TOTAL_BYTES:
        # Single grid step, batch handled by an in-kernel broadcast.
        out = pl.pallas_call(
            _add_pe_bcast_kernel,
            out_shape=jax.ShapeDtypeStruct(xr.shape, x.dtype),
            grid_spec=pltpu.PrefetchScalarGridSpec(
                num_scalar_prefetch=0,
                grid=(1,),
                in_specs=[
                    pl.BlockSpec((batch, rows, lane), lambda i: (0, 0, 0)),
                    pl.BlockSpec((rows, lane), lambda i: (0, 0)),
                ],
                out_specs=pl.BlockSpec((batch, rows, lane), lambda i: (0, 0, 0)),
            ),
        )(xr, per)
    else:
        tr = _pick_row_tile(rows, lane, x_bytes, pe_bytes)
        n_row_tiles = pl.cdiv(rows, tr)
        # Row-tiles outer, batch inner: the PE block index does not change
        # across consecutive batch steps, so its DMA is elided on revisits.
        # With >=2 row tiles, mark batch "arbitrary" so v7x megacore sharding
        # splits rows (disjoint PE reads per core) rather than batch.
        batch_sem = "arbitrary" if n_row_tiles >= 2 else "parallel"

        out = pl.pallas_call(
            _add_pe_kernel,
            out_shape=jax.ShapeDtypeStruct(xr.shape, x.dtype),
            grid_spec=pltpu.PrefetchScalarGridSpec(
                num_scalar_prefetch=0,
                grid=(n_row_tiles, batch),
                in_specs=[
                    # Batch dim squeezed (None) -> kernel refs are 2-D.
                    pl.BlockSpec((None, tr, lane), lambda r, b: (b, r, 0)),
                    pl.BlockSpec((tr, lane), lambda r, b: (r, 0)),
                ],
                out_specs=pl.BlockSpec((None, tr, lane), lambda r, b: (b, r, 0)),
            ),
            compiler_params=pltpu.CompilerParams(
                dimension_semantics=("parallel", batch_sem),
            ),
        )(xr, per)

    out = out.reshape(batch, seq_padded, d_model)
    if seq_pad:
        out = out[:, :seq_len, :]
    return out


def _reference(x: jax.Array) -> jax.Array:
    """Pure-JAX reference replicating the PyTorch forward (eval mode)."""
    seq_len, d_model = x.shape[1], x.shape[2]
    return x + _build_pe(seq_len, d_model)[None, :, :]


if __name__ == "__main__":
    key = jax.random.PRNGKey(0)

    # (batch, seq_len, d_model). The module's forward implies d_model=32,
    # seq_len=8; extra shapes exercise the padded lane-dense path and the
    # tiled (multi-row-tile / partial-tile) path.
    test_shapes = [
        (2, 8, 32),      # module default: tiny path, no padding
        (2, 37, 32),     # tiny path, seq padded 37 -> 40 for lane density
        (4, 256, 256),   # tiled path, single row tile, batch-inner revisits
        (1, 2052, 256),  # tiled path, 2 row tiles with a partial last tile
    ]

    for i, (b, s, d) in enumerate(test_shapes):
        k = jax.random.fold_in(key, i)
        x = jax.random.normal(k, (b, s, d), dtype=jnp.float32)

        out = positional_encoding(x)
        jax.block_until_ready(out)

        ref = _reference(x)
        assert out.shape == (b, s, d), f"shape mismatch at {(b, s, d)}"
        assert jnp.allclose(out, ref, atol=1e-5, rtol=1e-5), (
            f"mismatch vs reference at shape {(b, s, d)}"
        )

    print("KERNEL_OK")
</pallas_src>

<mosaic_0001>
module attributes {stable_mosaic.version = 11 : i64} {
  func.func @_add_pe_bcast_kernel(%arg0: i32, %arg1: memref<2x2x128xf32, #tpu.memory_space<vmem>>, %arg2: memref<2x128xf32, #tpu.memory_space<vmem>>, %arg3: memref<2x2x128xf32, #tpu.memory_space<vmem>>) attributes {dimension_semantics = [#tpu.dimension_semantics<arbitrary>], iteration_bounds = array<i64: 1>, scalar_prefetch = 0 : i64, scratch_operands = 0 : i64, tpu.core_type = #tpu.core_type<tc>, window_params = [{pipeline_mode = #tpu.pipeline_mode<synchronous>, transform_indices = @transform_0, window_bounds = array<i64: 2, 2, 128>}, {pipeline_mode = #tpu.pipeline_mode<synchronous>, transform_indices = @transform_1, window_bounds = array<i64: 2, 128>}, {pipeline_mode = #tpu.pipeline_mode<synchronous>, transform_indices = @transform_2, window_bounds = array<i64: 2, 2, 128>}]} {
    %c0 = arith.constant 0 : index
    %c0_0 = arith.constant 0 : index
    %c0_1 = arith.constant 0 : index
    %0 = vector.load %arg1[%c0, %c0_0, %c0_1] : memref<2x2x128xf32, #tpu.memory_space<vmem>>, vector<2x2x128xf32>
    %c0_2 = arith.constant 0 : index
    %c0_3 = arith.constant 0 : index
    %1 = vector.load %arg2[%c0_2, %c0_3] : memref<2x128xf32, #tpu.memory_space<vmem>>, vector<2x128xf32>
    %2 = vector.shape_cast %1 : vector<2x128xf32> to vector<1x2x128xf32>
    %3 = vector.broadcast %2 : vector<1x2x128xf32> to vector<2x2x128xf32>
    %4 = arith.addf %0, %3 : vector<2x2x128xf32>
    %c0_4 = arith.constant 0 : index
    %c0_5 = arith.constant 0 : index
    %c0_6 = arith.constant 0 : index
    %5 = vector.load %arg3[%c0_4, %c0_5, %c0_6] : memref<2x2x128xf32, #tpu.memory_space<vmem>>, vector<2x2x128xf32>
    tpu.vector_store %arg3[%c0_4, %c0_5, %c0_6], %4 {strides = array<i32>} : memref<2x2x128xf32, #tpu.memory_space<vmem>>, vector<2x2x128xf32>,
    return
  }
  func.func @transform_0(%arg0: i32) -> (i32, i32, i32) {
    %c0_i32 = arith.constant 0 : i32
    %c0_i32_0 = arith.constant 0 : i32
    %c0_i32_1 = arith.constant 0 : i32
    %c0_i32_2 = arith.constant 0 : i32
    return %c0_i32, %c0_i32_0, %c0_i32_1 : i32, i32, i32
  }
  func.func @transform_1(%arg0: i32) -> (i32, i32) {
    %c0_i32 = arith.constant 0 : i32
    %c0_i32_0 = arith.constant 0 : i32
    %c0_i32_1 = arith.constant 0 : i32
    return %c0_i32, %c0_i32_0 : i32, i32
  }
  func.func @transform_2(%arg0: i32) -> (i32, i32, i32) {
    %c0_i32 = arith.constant 0 : i32
    %c0_i32_0 = arith.constant 0 : i32
    %c0_i32_1 = arith.constant 0 : i32
    %c0_i32_2 = arith.constant 0 : i32
    return %c0_i32, %c0_i32_0, %c0_i32_1 : i32, i32, i32
  }
}

</mosaic_0001>

<bundles_post_ra>
// kernel: tpu_custom_call.1
= control target key start
LH: loop header
LB: loop body
LE: loop exit
PB: predicated region body
PF: predicated region fallthrough
CT: control target
= control target key end

     0   :  { %7 = vsyncpa [#allocation3], 0  ;;  %s169_s0 = inlined_call_operand.hbm [shape: f32[2,2,128], index: 0, kind: input, shape index: {}]   ;;  %s170_s1 = inlined_call_operand.hbm [shape: f32[2,128], index: 1, kind: input, shape index: {}]   ;;  %s171_s2 = inlined_call_operand.hbm [shape: f32[2,2,128], index: 2, kind: output, shape index: {}]  }
   0x1   :  { %8 = vsyncpa [#allocation6], 0 }
   0x2   :  { %9 = vsyncpa [#allocation4], 0  ;;  %s134_s9 = smov [#allocation2]  }
   0x3   :  { %s15_s10 = sshll.u32 %s134_s9, 4  ;;  %s16_s10 = int_to_ptr.vmem [resolvable:$true] %s15_s10 }
   0x4   :  { %s76_s11 = scalar_lea.vmem %s16_s10, 64  ;;  %p81_p1 = scmp.lt.s32.totalorder %s16_s10, %s16_s10 }
   0x5   :  { %p77_p0 = scmp.ne.s32.totalorder %s16_s10, %s76_s11  ;;  %p82_p2 = scmp.lt.s32.totalorder %s76_s11, %s76_s11 }
   0x7   :  { %p83_p3 = por %p82_p2, %p81_p1 }
   0x9   :  { %p84_p4 = pnand %p83_p3, %p77_p0 }
   0xb   :  { %87 = shalt.err (!%p84_p4)
}
   0xc   :  { %s135_s12 = smov 32   ;;  %s136_s13 = smov 2  }
   0xd   :  { %21 = dma.hbm_to_vmem [thread:$0]  %s169_s0, 64, %s16_s10, [#allocation3], %s135_s12, %s135_s12, %s136_s13  }
   0xe   :  { %s137_s16 = smov [#allocation5]  }
   0xf   :  { %s28_s17 = sshll.u32 %s137_s16, 4  ;;  %s29_s17 = int_to_ptr.vmem [resolvable:$true] %s28_s17 }
  0x10   :  { %s96_s18 = scalar_lea.vmem %s29_s17, 32  ;;  %p101_p6 = scmp.lt.s32.totalorder %s29_s17, %s29_s17 }
  0x11   :  { %p97_p5 = scmp.ne.s32.totalorder %s29_s17, %s96_s18  ;;  %p102_p7 = scmp.lt.s32.totalorder %s96_s18, %s96_s18 }
  0x13   :  { %p103_p8 = por %p102_p7, %p101_p6 }
  0x15   :  { %p104_p9 = pnand %p103_p8, %p97_p5 }
  0x17   :  { %107 = shalt.err (!%p104_p9)
}
  0x18   :  { %31 = dma.hbm_to_vmem [thread:$0]  %s170_s1, 32, %s29_s17, [#allocation6]  }
  0x19   :  { %128 = dma.done.wait [#allocation3], 64  }
  0x1a   :  { %129 = vsyncadd [#allocation3], 4294967232 }
  0x1b   :  { %130 = dma.done.wait [#allocation6], 32  }
  0x1c   :  { %131 = vsyncadd [#allocation6], 4294967264  ;;  %s138_s21 = smov [#allocation7]   ;;  %v38_v0 = vld [vmem:[#allocation2] sm:$0x3] }
  0x1d   :  { %s50_s0 = sshll.u32 %s138_s21, 4  ;;  %v40_v1 = vld [vmem:[#allocation5] sm:$0x3]  ;;  %v39_v2 = vld [vmem:[#allocation2 + $0x2] sm:$0x3]  ;;  %s51_s0 = int_to_ptr.vmem [resolvable:$true] %s50_s0 }
  0x1e   :  { %v41_v3 = vadd.f32 %v40_v1, %v38_v0  ;;  %v42_v4 = vadd.f32 %v40_v1, %v39_v2  ;;  %s108_s22 = scalar_lea.vmem %s51_s0, 64  ;;  %p113_p11 = scmp.lt.s32.totalorder %s51_s0, %s51_s0 }
  0x1f   :  { %p109_p10 = scmp.ne.s32.totalorder %s51_s0, %s108_s22  ;;  %p114_p12 = scmp.lt.s32.totalorder %s108_s22, %s108_s22 }
  0x20   :  { %43 = vst [vmem:[#allocation7] sm:$0x3] %v41_v3  ;;  %44 = vst [vmem:[#allocation7 + $0x2] sm:$0x3] %v42_v4 }
  0x21   :  { %p115_p13 = por %p114_p12, %p113_p11 }
  0x23   :  { %p116_p0 = pnand %p115_p13, %p109_p10 }
  0x25   :  { %119 = shalt.err (!%p116_p0)
}
  0x26   :  { %56 = dma.vmem_to_hbm [thread:$0]  %s51_s0, 64, %s171_s2, [#allocation4], %s135_s12, %s135_s12, %s136_s13  }
  0x27   :  { %132 = dma.done.wait [#allocation4], 64  }
  0x28   :  { %133 = vsyncadd [#allocation4], 4294967232 }
  0x29   :  { %60 = vsyncpa [#allocation3], 1 }
  0x2a   :  { %61 = vsyncpa [#allocation6], 1 }
  0x2b   :  { %62 = vsyncpa [#allocation4], 1 }

</bundles_post_ra>
